<compile_context>
chip_gen: v7x
topology: tpu7x:2x2x1
jax: 0.10.0
libtpu: 0.0.40
codegen_flags: <defaults>
</compile_context>

<pallas_src>
import math
import functools

import jax
import jax.numpy as jnp
from jax.experimental import pallas as pl
from jax.experimental.pallas import tpu as pltpu


# ----------------------------- kernels --------------------------------------


def _pe_add_kernel(x_ref, pe_ref, o_ref):
    # x_ref: (seq_tile, B, D); pe_ref: (seq_tile, 1, D) -> broadcast over batch.
    o_ref[...] = (x_ref[...] + pe_ref[...]).astype(o_ref.dtype)


def _pe_add_dropout_kernel(x_ref, pe_ref, bits_ref, o_ref, *, threshold, scale):
    y = x_ref[...] + pe_ref[...]
    # Inverted dropout with an integer threshold compare (keep prob = 1 - p).
    keep = bits_ref[...] >= jnp.uint32(threshold)
    y = jnp.where(keep, y * jnp.asarray(scale, y.dtype), jnp.zeros_like(y))
    o_ref[...] = y.astype(o_ref.dtype)


# ----------------------------- helpers --------------------------------------


def _round_up(x, m):
    return (x + m - 1) // m * m


def _padded_block_bytes(block_shape, itemsize):
    """Conservative VMEM footprint: last two dims pad to the native tile."""
    sublane = {4: 8, 2: 16, 1: 32}.get(itemsize, 8)
    lead = 1
    for d in block_shape[:-2]:
        lead *= d
    return lead * _round_up(block_shape[-2], sublane) * _round_up(block_shape[-1], 128) * itemsize


def _pick_seq_tile(S, B, D, itemsize, target_bytes=2 << 20):
    """Largest seq tile whose padded (seq_tile, B, D) block is ~target_bytes."""
    per_row = _padded_block_bytes((1, B, D), itemsize)
    rows = max(1, target_bytes // per_row)
    if rows >= S:
        return S
    return min(S, max(8, (rows // 8) * 8))


def make_pe_table(max_seq_length, d_model, dtype=jnp.float32):
    """Same construction as the PyTorch buffer: shape (max_seq, 1, d_model)."""
    position = jnp.arange(max_seq_length, dtype=jnp.float32)[:, None]
    div_term = jnp.exp(jnp.arange(0, d_model, 2, dtype=jnp.float32)
                       * (-math.log(10000.0) / d_model))
    angles = position * div_term
    pe = jnp.zeros((max_seq_length, d_model), jnp.float32)
    pe = pe.at[:, 0::2].set(jnp.sin(angles))
    pe = pe.at[:, 1::2].set(jnp.cos(angles))
    return pe.astype(dtype)[:, None, :]


# ----------------------------- wrapper --------------------------------------


def positional_encoding(x, pe_table, *, p_drop=0.1, training=False, rng_key=None,
                        seq_tile=None, block_bytes_target=2 << 20):
    """Returns dropout(x + pe[:seq_len]).  x: (seq_len, batch, d_model)."""
    S, B, D = x.shape
    MS, one, Dp = pe_table.shape
    assert one == 1 and Dp == D, "pe_table must be (max_seq, 1, d_model)"
    assert S <= MS, "sequence longer than max_seq_length"

    itemsize = jnp.dtype(x.dtype).itemsize
    if seq_tile is None:
        seq_tile = _pick_seq_tile(S, B, D, itemsize, block_bytes_target)
    seq_tile = min(int(seq_tile), S)
    grid = (pl.cdiv(S, seq_tile),)

    x_spec = pl.BlockSpec((seq_tile, B, D), lambda i: (i, 0, 0))
    pe_spec = pl.BlockSpec((seq_tile, 1, D), lambda i: (i, 0, 0))
    out_spec = pl.BlockSpec((seq_tile, B, D), lambda i: (i, 0, 0))

    use_dropout = bool(training) and float(p_drop) > 0.0

    # Explicit VMEM budget: every block double-buffered, plus headroom.
    pe_isz = jnp.dtype(pe_table.dtype).itemsize
    block_bytes = (_padded_block_bytes((seq_tile, B, D), itemsize)       # x
                   + _padded_block_bytes((seq_tile, 1, D), pe_isz)       # pe
                   + _padded_block_bytes((seq_tile, B, D), itemsize))    # out
    if use_dropout:
        block_bytes += _padded_block_bytes((seq_tile, B, D), 4)          # bits
    vmem_limit = int(min(64 << 20, max(16 << 20, 2 * block_bytes + (1 << 20))))

    cparams = pltpu.CompilerParams(
        dimension_semantics=("parallel",),
        vmem_limit_bytes=vmem_limit,
    )
    out_shape = jax.ShapeDtypeStruct((S, B, D), x.dtype)

    if not use_dropout:
        return pl.pallas_call(
            _pe_add_kernel,
            out_shape=out_shape,
            grid_spec=pltpu.PrefetchScalarGridSpec(
                num_scalar_prefetch=0,
                grid=grid,
                in_specs=[x_spec, pe_spec],
                out_specs=out_spec,
            ),
            compiler_params=cparams,
        )(x, pe_table)

    if rng_key is None:
        raise ValueError("training=True with p_drop>0 requires rng_key")

    keep_prob = 1.0 - float(p_drop)
    threshold = min(int(round(float(p_drop) * 2.0 ** 32)), 2 ** 32 - 1)
    bits = jax.random.bits(rng_key, (S, B, D), dtype=jnp.uint32)

    kernel = functools.partial(_pe_add_dropout_kernel,
                               threshold=threshold, scale=1.0 / keep_prob)
    return pl.pallas_call(
        kernel,
        out_shape=out_shape,
        grid_spec=pltpu.PrefetchScalarGridSpec(
            num_scalar_prefetch=0,
            grid=grid,
            in_specs=[x_spec, pe_spec, x_spec],   # bits tiled like x
            out_specs=out_spec,
        ),
        compiler_params=cparams,
    )(x, pe_table, bits)


# ----------------------------- reference & demo -----------------------------


def _reference(x, max_seq_length):
    """Pure-JAX reference mirroring the PyTorch module in eval mode."""
    S, _, D = x.shape
    pe = make_pe_table(max_seq_length, D, dtype=jnp.float32)
    return x + pe[:S]


if __name__ == "__main__":
    d_model = 32
    max_seq_length = 64
    seq_len = 16
    batch = 2
    p_drop = 0.1

    key = jax.random.PRNGKey(0)
    kx, kd = jax.random.split(key)
    x = jax.random.normal(kx, (seq_len, batch, d_model), dtype=jnp.float32)

    pe_table = make_pe_table(max_seq_length, d_model, dtype=x.dtype)

    # Eval-mode forward (dropout is identity, matching module.eval()).
    out = positional_encoding(x, pe_table, p_drop=p_drop, training=False)
    out = jax.block_until_ready(out)

    ref = _reference(x, max_seq_length)
    assert out.shape == x.shape and out.dtype == x.dtype
    assert jnp.allclose(out, ref, atol=1e-5, rtol=1e-5), "mismatch vs reference"

    # Training-mode forward (integer-threshold dropout; deterministic per key).
    out_train = positional_encoding(x, pe_table, p_drop=p_drop,
                                    training=True, rng_key=kd)
    out_train = jax.block_until_ready(out_train)
    # Every element is either exactly dropped (0) or scaled by 1/(1-p).
    scaled = ref / (1.0 - p_drop)
    ok = (jnp.isclose(out_train, scaled, atol=1e-5, rtol=1e-5)
          | jnp.isclose(out_train, 0.0, atol=1e-6))
    assert bool(jnp.all(ok)), "dropout output is neither kept/scaled nor zero"

    print("KERNEL_OK")
</pallas_src>

<mosaic_0001>
module attributes {stable_mosaic.version = 11 : i64} {
  func.func @_pe_add_kernel(%arg0: i32, %arg1: memref<16x2x32xf32, #tpu.memory_space<vmem>>, %arg2: memref<16x1x32xf32, #tpu.memory_space<vmem>>, %arg3: memref<16x2x32xf32, #tpu.memory_space<vmem>>) attributes {dimension_semantics = [#tpu.dimension_semantics<parallel>], iteration_bounds = array<i64: 1>, scalar_prefetch = 0 : i64, scratch_operands = 0 : i64, tpu.core_type = #tpu.core_type<tc>, window_params = [{transform_indices = @transform_0, window_bounds = array<i64: 16, 2, 32>}, {transform_indices = @transform_1, window_bounds = array<i64: 16, 1, 32>}, {transform_indices = @transform_2, window_bounds = array<i64: 16, 2, 32>}]} {
    %c0 = arith.constant 0 : index
    %c0_0 = arith.constant 0 : index
    %c0_1 = arith.constant 0 : index
    %0 = vector.load %arg1[%c0, %c0_0, %c0_1] : memref<16x2x32xf32, #tpu.memory_space<vmem>>, vector<16x2x32xf32>
    %c0_2 = arith.constant 0 : index
    %c0_3 = arith.constant 0 : index
    %c0_4 = arith.constant 0 : index
    %1 = vector.load %arg2[%c0_2, %c0_3, %c0_4] : memref<16x1x32xf32, #tpu.memory_space<vmem>>, vector<16x1x32xf32>
    %2 = vector.broadcast %1 : vector<16x1x32xf32> to vector<16x2x32xf32>
    %3 = arith.addf %0, %2 : vector<16x2x32xf32>
    %c0_5 = arith.constant 0 : index
    %c0_6 = arith.constant 0 : index
    %c0_7 = arith.constant 0 : index
    %4 = vector.load %arg3[%c0_5, %c0_6, %c0_7] : memref<16x2x32xf32, #tpu.memory_space<vmem>>, vector<16x2x32xf32>
    tpu.vector_store %arg3[%c0_5, %c0_6, %c0_7], %3 {strides = array<i32>} : memref<16x2x32xf32, #tpu.memory_space<vmem>>, vector<16x2x32xf32>,
    return
  }
  func.func @transform_0(%arg0: i32) -> (i32, i32, i32) {
    %c0_i32 = arith.constant 0 : i32
    %c0_i32_0 = arith.constant 0 : i32
    %c0_i32_1 = arith.constant 0 : i32
    return %arg0, %c0_i32, %c0_i32_0 : i32, i32, i32
  }
  func.func @transform_1(%arg0: i32) -> (i32, i32, i32) {
    %c0_i32 = arith.constant 0 : i32
    %c0_i32_0 = arith.constant 0 : i32
    %c0_i32_1 = arith.constant 0 : i32
    return %arg0, %c0_i32, %c0_i32_0 : i32, i32, i32
  }
  func.func @transform_2(%arg0: i32) -> (i32, i32, i32) {
    %c0_i32 = arith.constant 0 : i32
    %c0_i32_0 = arith.constant 0 : i32
    %c0_i32_1 = arith.constant 0 : i32
    return %arg0, %c0_i32, %c0_i32_0 : i32, i32, i32
  }
}

</mosaic_0001>

<bundles_post_ra>
// kernel: tpu_custom_call.1
= control target key start
LH: loop header
LB: loop body
LE: loop exit
PB: predicated region body
PF: predicated region fallthrough
CT: control target
= control target key end

     0   :  { %vm156_vm0 = vcmask 254976   ;;  %s374_s0 = inlined_call_operand.vmem [shape: f32[16,2,32], index: 0, kind: input, shape index: {}]   ;;  %s375_s1 = inlined_call_operand.vmem [shape: f32[64,1,32], index: 1, kind: input, shape index: {}]   ;;  %s376_s2 = inlined_call_operand.hbm [shape: f32[16,2,32], index: 2, kind: output, shape index: {}]  }
   0x1   :  { %v12_v0 = vld [vmem:[%s374_s0] sm:$0x3]  ;;  %v13_v3 = vld [vmem:[%s374_s0 + $0x2] sm:$0x3]  ;;  %v14_v5 = vld [vmem:[%s374_s0 + $0x4] sm:$0x3] }
   0x2   :  { %v189_v1 = vld [vmem:[%s375_s1] ss:$0 sm:$0xff]  ;;  %v190_v4 = vld [vmem:[%s375_s1 + $0x1] ss:$0 sm:$0xff]  ;;  %v191_v7 = vld [vmem:[%s375_s1 + $0x2] ss:$0 sm:$0xff] }
   0x3   :  { %v140_v2 = vadd.f32 %v189_v1, %v12_v0  ;;  %v141_v6 = vadd.f32 %v190_v4, %v13_v3  ;;  %v15_v8 = vld [vmem:[%s374_s0 + $0x6] sm:$0x3]  ;;  %v192_v9 = vld [vmem:[%s375_s1 + $0x3] ss:$0 sm:$0xff]  ;;  %v142_v10 = vadd.f32 %v191_v7, %v14_v5  ;;  %v16_v12 = vld [vmem:[%s374_s0 + $0x8] sm:$0x3] }
   0x4   :  { %v143_v11 = vadd.f32 %v192_v9, %v15_v8  ;;  %v193_v13 = vld [vmem:[%s375_s1 + $0x4] ss:$0 sm:$0xff]  ;;  %v17_v14 = vld [vmem:[%s374_s0 + $0xa] sm:$0x3]  ;;  %v194_v16 = vld [vmem:[%s375_s1 + $0x5] ss:$0 sm:$0xff] }
   0x5   :  { %157 = vst.msk [vmem:[#allocation2] sm:$0x3] %vm156_vm0, %v140_v2  ;;  %158 = vst.msk [vmem:[#allocation2 + $0x2] sm:$0x3] %vm156_vm0, %v141_v6  ;;  %v144_v15 = vadd.f32 %v193_v13, %v16_v12  ;;  %v18_v17 = vld [vmem:[%s374_s0 + $0xc] sm:$0x3]  ;;  %v145_v19 = vadd.f32 %v194_v16, %v17_v14 }
   0x6   :  { %v195_v18 = vld [vmem:[%s375_s1 + $0x6] ss:$0 sm:$0xff]  ;;  %159 = vst.msk [vmem:[#allocation2 + $0x4] sm:$0x3] %vm156_vm0, %v142_v10  ;;  %160 = vst.msk [vmem:[#allocation2 + $0x6] sm:$0x3] %vm156_vm0, %v143_v11 }
   0x7   :  { %v146_v20 = vadd.f32 %v195_v18, %v18_v17  ;;  %v19_v21 = vld [vmem:[%s374_s0 + $0xe] sm:$0x3]  ;;  %v196_v22 = vld [vmem:[%s375_s1 + $0x7] ss:$0 sm:$0xff]  ;;  %v20_v23 = vld [vmem:[%s374_s0 + $0x10] sm:$0x3] }
   0x8   :  { %161 = vst.msk [vmem:[#allocation2 + $0x8] sm:$0x3] %vm156_vm0, %v144_v15  ;;  %v147_v24 = vadd.f32 %v196_v22, %v19_v21  ;;  %v197_v25 = vld [vmem:[%s375_s1 + $0x8] ss:$0 sm:$0xff]  ;;  %v21_v26 = vld [vmem:[%s374_s0 + $0x12] sm:$0x3] }
   0x9   :  { %v198_v27 = vld [vmem:[%s375_s1 + $0x9] ss:$0 sm:$0xff]  ;;  %162 = vst.msk [vmem:[#allocation2 + $0xa] sm:$0x3] %vm156_vm0, %v145_v19  ;;  %163 = vst.msk [vmem:[#allocation2 + $0xc] sm:$0x3] %vm156_vm0, %v146_v20  ;;  %v148_v28 = vadd.f32 %v197_v25, %v20_v23 }
   0xa   :  { %v149_v29 = vadd.f32 %v198_v27, %v21_v26  ;;  %v22_v30 = vld [vmem:[%s374_s0 + $0x14] sm:$0x3]  ;;  %v199_v31 = vld [vmem:[%s375_s1 + $0xa] ss:$0 sm:$0xff]  ;;  %v23_v32 = vld [vmem:[%s374_s0 + $0x16] sm:$0x3] }
   0xb   :  { %164 = vst.msk [vmem:[#allocation2 + $0xe] sm:$0x3] %vm156_vm0, %v147_v24  ;;  %v150_v33 = vadd.f32 %v199_v31, %v22_v30  ;;  %v200_v34 = vld [vmem:[%s375_s1 + $0xb] ss:$0 sm:$0xff]  ;;  %v24_v35 = vld [vmem:[%s374_s0 + $0x18] sm:$0x3] }
   0xc   :  { %v201_v36 = vld [vmem:[%s375_s1 + $0xc] ss:$0 sm:$0xff]  ;;  %165 = vst.msk [vmem:[#allocation2 + $0x10] sm:$0x3] %vm156_vm0, %v148_v28  ;;  %166 = vst.msk [vmem:[#allocation2 + $0x12] sm:$0x3] %vm156_vm0, %v149_v29  ;;  %v151_v37 = vadd.f32 %v200_v34, %v23_v32 }
   0xd   :  { %v152_v38 = vadd.f32 %v201_v36, %v24_v35  ;;  %v25_v39 = vld [vmem:[%s374_s0 + $0x1a] sm:$0x3]  ;;  %v202_v40 = vld [vmem:[%s375_s1 + $0xd] ss:$0 sm:$0xff]  ;;  %v26_v41 = vld [vmem:[%s374_s0 + $0x1c] sm:$0x3] }
   0xe   :  { %167 = vst.msk [vmem:[#allocation2 + $0x14] sm:$0x3] %vm156_vm0, %v150_v33  ;;  %v153_v42 = vadd.f32 %v202_v40, %v25_v39  ;;  %v203_v43 = vld [vmem:[%s375_s1 + $0xe] ss:$0 sm:$0xff]  ;;  %v27_v44 = vld [vmem:[%s374_s0 + $0x1e] sm:$0x3] }
   0xf   :  { %v204_v45 = vld [vmem:[%s375_s1 + $0xf] ss:$0 sm:$0xff]  ;;  %168 = vst.msk [vmem:[#allocation2 + $0x16] sm:$0x3] %vm156_vm0, %v151_v37  ;;  %169 = vst.msk [vmem:[#allocation2 + $0x18] sm:$0x3] %vm156_vm0, %v152_v38  ;;  %v154_v46 = vadd.f32 %v203_v43, %v26_v41 }
  0x10   :  { %v155_v47 = vadd.f32 %v204_v45, %v27_v44 }
  0x11   :  { %7 = vsyncpa [#allocation3], 0  ;;  %s232_s17 = smov [#allocation2]   ;;  %170 = vst.msk [vmem:[#allocation2 + $0x1a] sm:$0x3] %vm156_vm0, %v153_v42 }
  0x12   :  { %s178_s18 = sshll.u32 %s232_s17, 4  ;;  %171 = vst.msk [vmem:[#allocation2 + $0x1c] sm:$0x3] %vm156_vm0, %v154_v46  ;;  %172 = vst.msk [vmem:[#allocation2 + $0x1e] sm:$0x3] %vm156_vm0, %v155_v47  ;;  %s179_s18 = int_to_ptr.vmem [resolvable:$true] %s178_s18 }
  0x13   :  { %s208_s0 = scalar_lea.vmem %s179_s18, 512  ;;  %p213_p1 = scmp.lt.s32.totalorder %s179_s18, %s179_s18 }
  0x14   :  { %p209_p0 = scmp.ne.s32.totalorder %s179_s18, %s208_s0  ;;  %p214_p2 = scmp.lt.s32.totalorder %s208_s0, %s208_s0 }
  0x16   :  { %p215_p3 = por %p214_p2, %p213_p1 }
  0x18   :  { %p216_p4 = pnand %p215_p3, %p209_p0 }
  0x1a   :  { %219 = shalt.err (!%p216_p4)
}
  0x1b   :  { %s220_s20 = scalar_lea.hbm %s376_s2, 512 }
  0x1c   :  { %p221_p5 = scmp.ne.s32.totalorder %s376_s2, %s220_s20  ;;  %p224_p6 = scmp.lt.u32.totalorder %s220_s20, %s376_s2 }
  0x1e   :  { %p226_p7 = pnand %p224_p6, %p221_p5 }
  0x20   :  { %229 = shalt.err (!%p226_p7)
}
  0x21   :  { %s233_s25 = smov 32   ;;  %s234_s26 = smov 2  }
  0x22   :  { %184 = dma.vmem_to_hbm [thread:$0]  %s179_s18, 512, %s376_s2, [#allocation3], %s233_s25, %s233_s25, %s234_s26  }
  0x23   :  { %230 = dma.done.wait [#allocation3], 512  }
  0x24   :  { %231 = vsyncadd [#allocation3], 4294966784 }
  0x25   :  { %188 = vsyncpa [#allocation3], 1 }

</bundles_post_ra>
